<compile_context>
chip_gen: v6e
topology: v6e:2x2x1
jax: 0.10.0
libtpu: 0.0.40
codegen_flags: <defaults>
</compile_context>

<pallas_src>
import functools

import jax
import jax.numpy as jnp
from jax.experimental import pallas as pl
from jax.experimental.pallas import tpu as pltpu


def _self_attention_kernel(x_ref, wqkv_ref, wproj_ref, bproj_ref, o_ref, *,
                           num_heads, flatten_out):
    # x_ref:     (1, N, C)      one sample per grid step
    # wqkv_ref:  (C, 3C)        fused QKV weight, scale folded into Q columns
    # wproj_ref: (C, C)         output projection weight (pre-transposed)
    # bproj_ref: (1, C)         output projection bias
    # o_ref:     (1, 1, N*C) if flatten_out else (1, N, C)
    _, N, C = x_ref.shape
    H = num_heads
    hd = C // H
    in_dtype = x_ref.dtype

    x2d = x_ref[0]                                               # (N, C)

    # Fused QKV projection: one lane-dense matmul, f32 accumulation on the MXU.
    qkv = jnp.dot(x2d, wqkv_ref[...],
                  preferred_element_type=jnp.float32).astype(in_dtype)  # (N, 3C)

    # Split heads with static lane slices + leading-axis stack -> (H, N, hd).
    def heads(base):
        return jnp.stack(
            [qkv[:, base + h * hd: base + (h + 1) * hd] for h in range(H)],
            axis=0)

    q = heads(0)
    k = heads(C)
    v = heads(2 * C)

    # Scores (scale already folded into q) + numerically-safe exp in f32.
    s = jnp.einsum('hnd,hmd->hnm', q, k,
                   preferred_element_type=jnp.float32)           # (H, N, N)
    s = s - jnp.max(s, axis=-1, keepdims=True)
    p = jnp.exp(s)
    denom = jnp.sum(p, axis=-1, keepdims=True)                   # (H, N, 1)

    # PV with unnormalised probabilities; normalise AFTER the matmul so the
    # scaling is hd-wide per row instead of N-wide (EUP reciprocal, off VPU).
    oh = jnp.einsum('hnm,hmd->hnd', p.astype(in_dtype), v,
                    preferred_element_type=jnp.float32)          # (H, N, hd) f32
    oh = oh * pl.reciprocal(denom, approx=True)

    # Concatenate heads on the lane axis and apply the output projection as one
    # (N, C) @ (C, C) matmul (contraction K = C instead of per-head K = hd).
    oc = jnp.concatenate([oh[h] for h in range(H)], axis=-1).astype(in_dtype)
    out = jnp.dot(oc, wproj_ref[...], preferred_element_type=jnp.float32)
    out = out + bproj_ref[...].astype(jnp.float32)               # (N, C) f32
    # proj_drop(p=0.0) is identity.

    if flatten_out:
        # Lane-dense store: one (1, N*C) row instead of N masked C-wide rows.
        out = jnp.concatenate([out[i:i + 1, :] for i in range(N)], axis=1)
    o_ref[...] = out.reshape(o_ref.shape).astype(o_ref.dtype)


def self_attention(x, w_qkv_t, w_proj_t, b_proj, thw, *, num_heads):
    """Pallas equivalent of SelfAttention.forward(x, thw).

    x:        (B, N, C)
    w_qkv_t:  (C, 3C)   == torch qkv.weight.T  (qkv_bias=False)
    w_proj_t: (C, C)    == torch proj.weight.T
    b_proj:   (1, C)    == torch proj.bias
    Returns (out, thw) with out of shape (B, N, C).
    """
    B, N, C = x.shape
    H = num_heads
    hd = C // H
    scale = hd ** (-0.5)

    # Trace-time weight prep (plain XLA outside the kernel): fold the attention
    # scale into the Q third of the fused QKV weight; bias as (1, C).
    wqkv = w_qkv_t.at[:, :C].multiply(scale)                     # (C, 3C)
    b_proj = b_proj.reshape(1, C)

    # Lane-dense (1, N*C) output rows only while the whole sequence fits one
    # block (the unrolled row-concat is a small-N device); gate it so big-N
    # configurations still compile with the natural (N, C) layout.
    flatten_out = N <= 64

    if flatten_out:
        out_shape = jax.ShapeDtypeStruct((B, 1, N * C), x.dtype)
        out_spec = pl.BlockSpec((1, 1, N * C), lambda b: (b, 0, 0))
    else:
        out_shape = jax.ShapeDtypeStruct((B, N, C), x.dtype)
        out_spec = pl.BlockSpec((1, N, C), lambda b: (b, 0, 0))

    kernel = functools.partial(_self_attention_kernel,
                               num_heads=H, flatten_out=flatten_out)

    itemsize = jnp.dtype(x.dtype).itemsize
    # Per-step VMEM footprint: double-buffered x/out tiles, (re-used) weights,
    # and the f32 intermediates (qkv, scores, probs, per-head outs, projection).
    tile_bytes = (2 * 2 * N * C * itemsize
                  + 2 * (3 * C * C + C * C + C) * itemsize
                  + 4 * (3 * N * C + 2 * H * N * N + H * N * hd + 2 * N * C))
    vmem_limit = int(min(64 * 2 ** 20, max(32 * 2 ** 20, 4 * tile_bytes)))

    cost = pl.CostEstimate(
        flops=2 * B * N * C * (3 * C) + 4 * B * H * N * N * hd + 2 * B * N * C * C,
        transcendentals=B * H * N * N,
        bytes_accessed=(2 * B * N * C + 3 * C * C + C * C + C) * itemsize,
    )

    out = pl.pallas_call(
        kernel,
        out_shape=out_shape,
        grid_spec=pltpu.PrefetchScalarGridSpec(
            num_scalar_prefetch=0,
            grid=(B,),                                  # >= 2 parallel steps (v7x)
            in_specs=[
                pl.BlockSpec((1, N, C), lambda b: (b, 0, 0)),    # x (per sample)
                pl.BlockSpec((C, 3 * C), lambda b: (0, 0)),      # fused Wqkv
                pl.BlockSpec((C, C), lambda b: (0, 0)),          # Wproj
                pl.BlockSpec((1, C), lambda b: (0, 0)),          # bproj
            ],
            out_specs=out_spec,
        ),
        compiler_params=pltpu.CompilerParams(
            dimension_semantics=("parallel",),
            vmem_limit_bytes=vmem_limit,
        ),
        cost_estimate=cost,
    )(x, wqkv, w_proj_t, b_proj)
    return out.reshape(B, N, C), thw


def _reference(x, w_qkv_t, w_proj_t, b_proj, num_heads):
    # Pure-JAX reference mirroring the PyTorch forward exactly.
    B, N, C = x.shape
    hd = C // num_heads
    scale = hd ** (-0.5)
    qkv = (x @ w_qkv_t).reshape(B, N, 3, num_heads, hd).transpose(2, 0, 3, 1, 4)
    q, k, v = qkv[0], qkv[1], qkv[2]                     # (B, H, N, hd)
    attn = (q @ jnp.swapaxes(k, -2, -1)) * scale
    attn = jax.nn.softmax(attn, axis=-1)
    out = (attn @ v).transpose(0, 2, 1, 3).reshape(B, N, C)
    return out @ w_proj_t + b_proj


if __name__ == "__main__":
    # Small shapes consistent with the module: dim=32, num_heads=8 -> head_dim=4.
    B, N, C = 2, 8, 32
    NUM_HEADS = 8

    key = jax.random.PRNGKey(0)
    kx, kq, kp, kb = jax.random.split(key, 4)

    x = jax.random.normal(kx, (B, N, C), dtype=jnp.float32)
    thw = (1, 4, 2)  # passed through untouched, as in the PyTorch module

    # Deterministic "parameters" (torch nn.Linear shapes, stored pre-transposed).
    w_qkv_t = 0.05 * jax.random.normal(kq, (C, 3 * C), dtype=jnp.float32)
    w_proj_t = 0.05 * jax.random.normal(kp, (C, C), dtype=jnp.float32)
    b_proj = 0.01 * jax.random.normal(kb, (1, C), dtype=jnp.float32)

    out, thw_out = self_attention(x, w_qkv_t, w_proj_t, b_proj, thw,
                                  num_heads=NUM_HEADS)
    out = jax.block_until_ready(out)

    ref = _reference(x, w_qkv_t, w_proj_t, b_proj, NUM_HEADS)
    assert out.shape == (B, N, C)
    assert thw_out == thw
    # Slightly looser tolerance than pure-f32 because the softmax denominator
    # uses the EUP approximate reciprocal (~2^-12 relative error).
    assert jnp.allclose(out, ref, atol=1e-3, rtol=1e-3), "mismatch vs reference"

    print("KERNEL_OK")
</pallas_src>

<mosaic_0001>
module attributes {stable_mosaic.version = 11 : i64} {
  func.func @_self_attention_kernel(%arg0: i32, %arg1: memref<1x8x32xf32, #tpu.memory_space<vmem>>, %arg2: memref<32x96xf32, #tpu.memory_space<vmem>>, %arg3: memref<32x32xf32, #tpu.memory_space<vmem>>, %arg4: memref<1x32xf32, #tpu.memory_space<vmem>>, %arg5: memref<1x1x256xf32, #tpu.memory_space<vmem>>) attributes {dimension_semantics = [#tpu.dimension_semantics<parallel>], iteration_bounds = array<i64: 2>, scalar_prefetch = 0 : i64, scratch_operands = 0 : i64, tpu.core_type = #tpu.core_type<tc>, window_params = [{transform_indices = @transform_0, window_bounds = array<i64: 1, 8, 32>}, {pipeline_mode = #tpu.pipeline_mode<synchronous>, transform_indices = @transform_1, window_bounds = array<i64: 32, 96>}, {pipeline_mode = #tpu.pipeline_mode<synchronous>, transform_indices = @transform_2, window_bounds = array<i64: 32, 32>}, {pipeline_mode = #tpu.pipeline_mode<synchronous>, transform_indices = @transform_3, window_bounds = array<i64: 1, 32>}, {transform_indices = @transform_4, window_bounds = array<i64: 1, 1, 256>}]} {
    %c0 = arith.constant 0 : index
    %c0_0 = arith.constant 0 : index
    %c0_1 = arith.constant 0 : index
    %0 = vector.load %arg1[%c0, %c0_0, %c0_1] : memref<1x8x32xf32, #tpu.memory_space<vmem>>, vector<1x8x32xf32>
    %1 = vector.shape_cast %0 : vector<1x8x32xf32> to vector<8x32xf32>
    %c0_2 = arith.constant 0 : index
    %c0_3 = arith.constant 0 : index
    %2 = vector.load %arg2[%c0_2, %c0_3] : memref<32x96xf32, #tpu.memory_space<vmem>>, vector<32x96xf32>
    %cst = arith.constant dense<0.000000e+00> : vector<8x96xf32>
    %3 = tpu.matmul %1, %2, %cst {dimension_numbers = #tpu.dot_dimension_numbers<[1], [0], [0], [1], [0, 0, 1, 1], [], []>} : vector<8x32xf32>, vector<32x96xf32>, vector<8x96xf32> -> vector<8x96xf32>
    %4 = vector.extract_strided_slice %3 {offsets = [0, 0], sizes = [8, 4], strides = [1, 1]} : vector<8x96xf32> to vector<8x4xf32>
    %5 = vector.extract_strided_slice %3 {offsets = [0, 4], sizes = [8, 4], strides = [1, 1]} : vector<8x96xf32> to vector<8x4xf32>
    %6 = vector.extract_strided_slice %3 {offsets = [0, 8], sizes = [8, 4], strides = [1, 1]} : vector<8x96xf32> to vector<8x4xf32>
    %7 = vector.extract_strided_slice %3 {offsets = [0, 12], sizes = [8, 4], strides = [1, 1]} : vector<8x96xf32> to vector<8x4xf32>
    %8 = vector.extract_strided_slice %3 {offsets = [0, 16], sizes = [8, 4], strides = [1, 1]} : vector<8x96xf32> to vector<8x4xf32>
    %9 = vector.extract_strided_slice %3 {offsets = [0, 20], sizes = [8, 4], strides = [1, 1]} : vector<8x96xf32> to vector<8x4xf32>
    %10 = vector.extract_strided_slice %3 {offsets = [0, 24], sizes = [8, 4], strides = [1, 1]} : vector<8x96xf32> to vector<8x4xf32>
    %11 = vector.extract_strided_slice %3 {offsets = [0, 28], sizes = [8, 4], strides = [1, 1]} : vector<8x96xf32> to vector<8x4xf32>
    %12 = vector.shape_cast %4 : vector<8x4xf32> to vector<1x8x4xf32>
    %13 = vector.shape_cast %5 : vector<8x4xf32> to vector<1x8x4xf32>
    %14 = vector.shape_cast %6 : vector<8x4xf32> to vector<1x8x4xf32>
    %15 = vector.shape_cast %7 : vector<8x4xf32> to vector<1x8x4xf32>
    %16 = vector.shape_cast %8 : vector<8x4xf32> to vector<1x8x4xf32>
    %17 = vector.shape_cast %9 : vector<8x4xf32> to vector<1x8x4xf32>
    %18 = vector.shape_cast %10 : vector<8x4xf32> to vector<1x8x4xf32>
    %19 = vector.shape_cast %11 : vector<8x4xf32> to vector<1x8x4xf32>
    %20 = tpu.concatenate %12, %13, %14, %15, %16, %17, %18, %19 in 0 : vector<1x8x4xf32>, vector<1x8x4xf32>, vector<1x8x4xf32>, vector<1x8x4xf32>, vector<1x8x4xf32>, vector<1x8x4xf32>, vector<1x8x4xf32>, vector<1x8x4xf32> -> vector<8x8x4xf32>
    %21 = vector.extract_strided_slice %3 {offsets = [0, 32], sizes = [8, 4], strides = [1, 1]} : vector<8x96xf32> to vector<8x4xf32>
    %22 = vector.extract_strided_slice %3 {offsets = [0, 36], sizes = [8, 4], strides = [1, 1]} : vector<8x96xf32> to vector<8x4xf32>
    %23 = vector.extract_strided_slice %3 {offsets = [0, 40], sizes = [8, 4], strides = [1, 1]} : vector<8x96xf32> to vector<8x4xf32>
    %24 = vector.extract_strided_slice %3 {offsets = [0, 44], sizes = [8, 4], strides = [1, 1]} : vector<8x96xf32> to vector<8x4xf32>
    %25 = vector.extract_strided_slice %3 {offsets = [0, 48], sizes = [8, 4], strides = [1, 1]} : vector<8x96xf32> to vector<8x4xf32>
    %26 = vector.extract_strided_slice %3 {offsets = [0, 52], sizes = [8, 4], strides = [1, 1]} : vector<8x96xf32> to vector<8x4xf32>
    %27 = vector.extract_strided_slice %3 {offsets = [0, 56], sizes = [8, 4], strides = [1, 1]} : vector<8x96xf32> to vector<8x4xf32>
    %28 = vector.extract_strided_slice %3 {offsets = [0, 60], sizes = [8, 4], strides = [1, 1]} : vector<8x96xf32> to vector<8x4xf32>
    %29 = vector.shape_cast %21 : vector<8x4xf32> to vector<1x8x4xf32>
    %30 = vector.shape_cast %22 : vector<8x4xf32> to vector<1x8x4xf32>
    %31 = vector.shape_cast %23 : vector<8x4xf32> to vector<1x8x4xf32>
    %32 = vector.shape_cast %24 : vector<8x4xf32> to vector<1x8x4xf32>
    %33 = vector.shape_cast %25 : vector<8x4xf32> to vector<1x8x4xf32>
    %34 = vector.shape_cast %26 : vector<8x4xf32> to vector<1x8x4xf32>
    %35 = vector.shape_cast %27 : vector<8x4xf32> to vector<1x8x4xf32>
    %36 = vector.shape_cast %28 : vector<8x4xf32> to vector<1x8x4xf32>
    %37 = tpu.concatenate %29, %30, %31, %32, %33, %34, %35, %36 in 0 : vector<1x8x4xf32>, vector<1x8x4xf32>, vector<1x8x4xf32>, vector<1x8x4xf32>, vector<1x8x4xf32>, vector<1x8x4xf32>, vector<1x8x4xf32>, vector<1x8x4xf32> -> vector<8x8x4xf32>
    %38 = vector.extract_strided_slice %3 {offsets = [0, 64], sizes = [8, 4], strides = [1, 1]} : vector<8x96xf32> to vector<8x4xf32>
    %39 = vector.extract_strided_slice %3 {offsets = [0, 68], sizes = [8, 4], strides = [1, 1]} : vector<8x96xf32> to vector<8x4xf32>
    %40 = vector.extract_strided_slice %3 {offsets = [0, 72], sizes = [8, 4], strides = [1, 1]} : vector<8x96xf32> to vector<8x4xf32>
    %41 = vector.extract_strided_slice %3 {offsets = [0, 76], sizes = [8, 4], strides = [1, 1]} : vector<8x96xf32> to vector<8x4xf32>
    %42 = vector.extract_strided_slice %3 {offsets = [0, 80], sizes = [8, 4], strides = [1, 1]} : vector<8x96xf32> to vector<8x4xf32>
    %43 = vector.extract_strided_slice %3 {offsets = [0, 84], sizes = [8, 4], strides = [1, 1]} : vector<8x96xf32> to vector<8x4xf32>
    %44 = vector.extract_strided_slice %3 {offsets = [0, 88], sizes = [8, 4], strides = [1, 1]} : vector<8x96xf32> to vector<8x4xf32>
    %45 = vector.extract_strided_slice %3 {offsets = [0, 92], sizes = [8, 4], strides = [1, 1]} : vector<8x96xf32> to vector<8x4xf32>
    %46 = vector.shape_cast %38 : vector<8x4xf32> to vector<1x8x4xf32>
    %47 = vector.shape_cast %39 : vector<8x4xf32> to vector<1x8x4xf32>
    %48 = vector.shape_cast %40 : vector<8x4xf32> to vector<1x8x4xf32>
    %49 = vector.shape_cast %41 : vector<8x4xf32> to vector<1x8x4xf32>
    %50 = vector.shape_cast %42 : vector<8x4xf32> to vector<1x8x4xf32>
    %51 = vector.shape_cast %43 : vector<8x4xf32> to vector<1x8x4xf32>
    %52 = vector.shape_cast %44 : vector<8x4xf32> to vector<1x8x4xf32>
    %53 = vector.shape_cast %45 : vector<8x4xf32> to vector<1x8x4xf32>
    %54 = tpu.concatenate %46, %47, %48, %49, %50, %51, %52, %53 in 0 : vector<1x8x4xf32>, vector<1x8x4xf32>, vector<1x8x4xf32>, vector<1x8x4xf32>, vector<1x8x4xf32>, vector<1x8x4xf32>, vector<1x8x4xf32>, vector<1x8x4xf32> -> vector<8x8x4xf32>
    "tpu.trace_start"() <{level = 10 : i32, message = "hnd,hmd->hnm"}> : () -> ()
    %cst_4 = arith.constant dense<0.000000e+00> : vector<8x8x8xf32>
    %55 = tpu.matmul %20, %37, %cst_4 {dimension_numbers = #tpu.dot_dimension_numbers<[2], [2], [1], [1], [0, 0, 0, 1, 1, 1], [0], [0]>} : vector<8x8x4xf32>, vector<8x8x4xf32>, vector<8x8x8xf32> -> vector<8x8x8xf32>
    "tpu.trace_stop"() : () -> ()
    %cst_5 = arith.constant dense<0xFF800000> : vector<8x8xf32>
    %56 = vector.multi_reduction <maximumf>, %55, %cst_5 [2] : vector<8x8x8xf32> to vector<8x8xf32>
    %57 = vector.shape_cast %56 : vector<8x8xf32> to vector<8x8x1xf32>
    %58 = vector.broadcast %57 : vector<8x8x1xf32> to vector<8x8x8xf32>
    %59 = arith.subf %55, %58 : vector<8x8x8xf32>
    %60 = math.exp %59 : vector<8x8x8xf32>
    %cst_6 = arith.constant dense<0.000000e+00> : vector<8x8xf32>
    %61 = vector.multi_reduction <add>, %60, %cst_6 [2] : vector<8x8x8xf32> to vector<8x8xf32>
    %62 = vector.shape_cast %61 : vector<8x8xf32> to vector<8x8x1xf32>
    "tpu.trace_start"() <{level = 10 : i32, message = "hnm,hmd->hnd"}> : () -> ()
    %cst_7 = arith.constant dense<0.000000e+00> : vector<8x8x4xf32>
    %63 = tpu.matmul %60, %54, %cst_7 {dimension_numbers = #tpu.dot_dimension_numbers<[2], [1], [1], [2], [0, 0, 0, 1, 1, 2], [0], [0]>} : vector<8x8x8xf32>, vector<8x8x4xf32>, vector<8x8x4xf32> -> vector<8x8x4xf32>
    "tpu.trace_stop"() : () -> ()
    %64 = tpu.reciprocal %62 {approx = true} : vector<8x8x1xf32> -> vector<8x8x1xf32>
    %65 = vector.broadcast %64 : vector<8x8x1xf32> to vector<8x8x4xf32>
    %66 = arith.mulf %63, %65 : vector<8x8x4xf32>
    %67 = vector.extract_strided_slice %66 {offsets = [0, 0, 0], sizes = [1, 8, 4], strides = [1, 1, 1]} : vector<8x8x4xf32> to vector<1x8x4xf32>
    %68 = vector.shape_cast %67 : vector<1x8x4xf32> to vector<8x4xf32>
    %69 = vector.extract_strided_slice %66 {offsets = [1, 0, 0], sizes = [1, 8, 4], strides = [1, 1, 1]} : vector<8x8x4xf32> to vector<1x8x4xf32>
    %70 = vector.shape_cast %69 : vector<1x8x4xf32> to vector<8x4xf32>
    %71 = vector.extract_strided_slice %66 {offsets = [2, 0, 0], sizes = [1, 8, 4], strides = [1, 1, 1]} : vector<8x8x4xf32> to vector<1x8x4xf32>
    %72 = vector.shape_cast %71 : vector<1x8x4xf32> to vector<8x4xf32>
    %73 = vector.extract_strided_slice %66 {offsets = [3, 0, 0], sizes = [1, 8, 4], strides = [1, 1, 1]} : vector<8x8x4xf32> to vector<1x8x4xf32>
    %74 = vector.shape_cast %73 : vector<1x8x4xf32> to vector<8x4xf32>
    %75 = vector.extract_strided_slice %66 {offsets = [4, 0, 0], sizes = [1, 8, 4], strides = [1, 1, 1]} : vector<8x8x4xf32> to vector<1x8x4xf32>
    %76 = vector.shape_cast %75 : vector<1x8x4xf32> to vector<8x4xf32>
    %77 = vector.extract_strided_slice %66 {offsets = [5, 0, 0], sizes = [1, 8, 4], strides = [1, 1, 1]} : vector<8x8x4xf32> to vector<1x8x4xf32>
    %78 = vector.shape_cast %77 : vector<1x8x4xf32> to vector<8x4xf32>
    %79 = vector.extract_strided_slice %66 {offsets = [6, 0, 0], sizes = [1, 8, 4], strides = [1, 1, 1]} : vector<8x8x4xf32> to vector<1x8x4xf32>
    %80 = vector.shape_cast %79 : vector<1x8x4xf32> to vector<8x4xf32>
    %81 = vector.extract_strided_slice %66 {offsets = [7, 0, 0], sizes = [1, 8, 4], strides = [1, 1, 1]} : vector<8x8x4xf32> to vector<1x8x4xf32>
    %82 = vector.shape_cast %81 : vector<1x8x4xf32> to vector<8x4xf32>
    %83 = tpu.concatenate %68, %70, %72, %74, %76, %78, %80, %82 in 1 : vector<8x4xf32>, vector<8x4xf32>, vector<8x4xf32>, vector<8x4xf32>, vector<8x4xf32>, vector<8x4xf32>, vector<8x4xf32>, vector<8x4xf32> -> vector<8x32xf32>
    %c0_8 = arith.constant 0 : index
    %c0_9 = arith.constant 0 : index
    %84 = vector.load %arg3[%c0_8, %c0_9] : memref<32x32xf32, #tpu.memory_space<vmem>>, vector<32x32xf32>
    %cst_10 = arith.constant dense<0.000000e+00> : vector<8x32xf32>
    %85 = tpu.matmul %83, %84, %cst_10 {dimension_numbers = #tpu.dot_dimension_numbers<[1], [0], [0], [1], [0, 0, 1, 1], [], []>} : vector<8x32xf32>, vector<32x32xf32>, vector<8x32xf32> -> vector<8x32xf32>
    %c0_11 = arith.constant 0 : index
    %c0_12 = arith.constant 0 : index
    %86 = vector.load %arg4[%c0_11, %c0_12] : memref<1x32xf32, #tpu.memory_space<vmem>>, vector<1x32xf32>
    %87 = vector.broadcast %86 : vector<1x32xf32> to vector<8x32xf32>
    %88 = arith.addf %85, %87 : vector<8x32xf32>
    %89 = vector.extract_strided_slice %88 {offsets = [0, 0], sizes = [1, 32], strides = [1, 1]} : vector<8x32xf32> to vector<1x32xf32>
    %90 = vector.extract_strided_slice %88 {offsets = [1, 0], sizes = [1, 32], strides = [1, 1]} : vector<8x32xf32> to vector<1x32xf32>
    %91 = vector.extract_strided_slice %88 {offsets = [2, 0], sizes = [1, 32], strides = [1, 1]} : vector<8x32xf32> to vector<1x32xf32>
    %92 = vector.extract_strided_slice %88 {offsets = [3, 0], sizes = [1, 32], strides = [1, 1]} : vector<8x32xf32> to vector<1x32xf32>
    %93 = vector.extract_strided_slice %88 {offsets = [4, 0], sizes = [1, 32], strides = [1, 1]} : vector<8x32xf32> to vector<1x32xf32>
    %94 = vector.extract_strided_slice %88 {offsets = [5, 0], sizes = [1, 32], strides = [1, 1]} : vector<8x32xf32> to vector<1x32xf32>
    %95 = vector.extract_strided_slice %88 {offsets = [6, 0], sizes = [1, 32], strides = [1, 1]} : vector<8x32xf32> to vector<1x32xf32>
    %96 = vector.extract_strided_slice %88 {offsets = [7, 0], sizes = [1, 32], strides = [1, 1]} : vector<8x32xf32> to vector<1x32xf32>
    %97 = tpu.concatenate %89, %90, %91, %92, %93, %94, %95, %96 in 1 : vector<1x32xf32>, vector<1x32xf32>, vector<1x32xf32>, vector<1x32xf32>, vector<1x32xf32>, vector<1x32xf32>, vector<1x32xf32>, vector<1x32xf32> -> vector<1x256xf32>
    %98 = vector.shape_cast %97 : vector<1x256xf32> to vector<1x1x256xf32>
    %c0_13 = arith.constant 0 : index
    %c0_14 = arith.constant 0 : index
    %c0_15 = arith.constant 0 : index
    %99 = vector.load %arg5[%c0_13, %c0_14, %c0_15] : memref<1x1x256xf32, #tpu.memory_space<vmem>>, vector<1x1x256xf32>
    tpu.vector_store %arg5[%c0_13, %c0_14, %c0_15], %98 {strides = array<i32>} : memref<1x1x256xf32, #tpu.memory_space<vmem>>, vector<1x1x256xf32>,
    return
  }
  func.func @transform_0(%arg0: i32) -> (i32, i32, i32) {
    %c0_i32 = arith.constant 0 : i32
    %c0_i32_0 = arith.constant 0 : i32
    %c0_i32_1 = arith.constant 0 : i32
    return %arg0, %c0_i32, %c0_i32_0 : i32, i32, i32
  }
  func.func @transform_1(%arg0: i32) -> (i32, i32) {
    %c0_i32 = arith.constant 0 : i32
    %c0_i32_0 = arith.constant 0 : i32
    %c0_i32_1 = arith.constant 0 : i32
    return %c0_i32, %c0_i32_0 : i32, i32
  }
  func.func @transform_2(%arg0: i32) -> (i32, i32) {
    %c0_i32 = arith.constant 0 : i32
    %c0_i32_0 = arith.constant 0 : i32
    %c0_i32_1 = arith.constant 0 : i32
    return %c0_i32, %c0_i32_0 : i32, i32
  }
  func.func @transform_3(%arg0: i32) -> (i32, i32) {
    %c0_i32 = arith.constant 0 : i32
    %c0_i32_0 = arith.constant 0 : i32
    %c0_i32_1 = arith.constant 0 : i32
    return %c0_i32, %c0_i32_0 : i32, i32
  }
  func.func @transform_4(%arg0: i32) -> (i32, i32, i32) {
    %c0_i32 = arith.constant 0 : i32
    %c0_i32_0 = arith.constant 0 : i32
    %c0_i32_1 = arith.constant 0 : i32
    return %arg0, %c0_i32, %c0_i32_0 : i32, i32, i32
  }
}

</mosaic_0001>

<bundles_post_ra>
// kernel: tpu_custom_call.1
= control target key start
LH: loop header
LB: loop body
LE: loop exit
PB: predicated region body
PF: predicated region fallthrough
CT: control target
= control target key end

     0   :  { %9 = vsyncpa [#allocation3], 0  ;;  %s2760_s0 = inlined_call_operand.hbm [shape: f32[2,8,32], index: 0, kind: input, shape index: {}]   ;;  %s2761_s1 = inlined_call_operand.hbm [shape: f32[32,96], index: 1, kind: input, shape index: {}]   ;;  %s2762_s2 = inlined_call_operand.hbm [shape: f32[32,32], index: 2, kind: input, shape index: {}]   ;;  %s2763_s3 = inlined_call_operand.vmem [shape: f32[1,32], index: 3, kind: input, shape index: {}]   ;;  %s2764_s4 = inlined_call_operand.hbm [shape: f32[2,1,256], index: 4, kind: output, shape index: {}]  }
   0x1   :  { %11 = vsyncpa [#allocation3 + $0x1], 0 }
   0x2   :  { %12 = vsyncpa [#allocation6], 0 }
   0x3   :  { %13 = vsyncpa [#allocation4], 0 }
   0x4   :  { %15 = vsyncpa [#allocation4 + $0x1], 0  ;;  %s2439_s15 = smov 0   ;;  %s2441_s16 = smov 0  }
   0x5   :  { %s2443_s17 = smov 0   ;;  %s2445_s18 = smov 0  }
   0x6 LB: > { %s2460_s19 = sadd.s32 4294967295, %s2386_s18   ;;  %s1928_s20 = sadd.s32 4294967294, %s2386_s18   ;;  %s2386_s18 = sphi %s2445_s18, %s2786_s18   ;;  %s2382_s17 = sphi %s2443_s17, %s2785_s17   ;;  %s2378_s16 = sphi %s2441_s16, %s2784_s16   ;;  %s2374_s15 = sphi %s2439_s15, %s2783_s15  }
   0x7   : > { %p41_p0 = scmp.ne.s32.totalorder %s2378_s16, %s2374_s15  ;;  %p2765_p1 = scmp.eq.s32.totalorder %s2460_s19, 0 }
   0x8   : > { %p134_p3 = scmp.eq.s32.totalorder %s1928_s20, 1  ;;  %p1929_p5 = scmp.ge.s32.totalorder %s2386_s18, 1 }
   0x9   : > { %p2469_p4 = por %p2765_p1, %p41_p0  ;;  %p141_p7 = scmp.lt.s32.totalorder %s2386_s18, 3 }
   0xa   : > { %p2474_p6 = por %p134_p3, %p41_p0  ;;  %s2388_s24 = smov [#allocation5]  }
   0xb   : > { %s2769_s21 = scalar_select %p2469_p4, 1, 0 }
   0xc   : > { %s2770_s22 = scalar_select %p2474_p6, 1, 0 }
   0xd   : > { %p2479_p8 = pnand %p1929_p5, %p141_p7  ;;  %s153_s25 = sshll.u32 %s2388_s24, 4  ;;  %s154_s25 = int_to_ptr.vmem [resolvable:$true] %s153_s25 }
   0xe   : > { %s2389_s27 = smov [#allocation7]   ;;  %s2249_s29 = scalar_lea.vmem %s154_s25, 512 }
   0xf   : > { %s2771_s23 = scalar_select %p2479_p8, 1, 0 }
  0x10   : > { %p2129_p9 = pneg %p2479_p8  ;;  %s166_s28 = sshll.u32 %s2389_s27, 4  ;;  %s167_s28 = int_to_ptr.vmem [resolvable:$true] %s166_s28 }
  0x11   : > { %p2250_p13 = scmp.ne.s32.totalorder %s154_s25, %s2249_s29  ;;  %p2257_p5 = scmp.lt.s32.totalorder %s154_s25, %s154_s25 }
  0x12   : > { %p2488_p11 = pnand %p2129_p9, %p2765_p1  ;;  %p2258_p7 = scmp.lt.s32.totalorder %s2249_s29, %s2249_s29 }
  0x14   : > { %p2240_p12 = pneg %p2488_p11  ;;  %p2259_p10 = por %p2258_p7, %p2257_p5 }
  0x16   : > { %p2252_p0 = pnand %p2250_p13, %p2240_p12 }
  0x18   : > { %p2253_p3 = pneg %p2252_p0 }
  0x1a   : > { %p2260_p9 = pnand %p2259_p10, %p2253_p3 }
  0x1c   : > { %2263 = shalt.err (!%p2260_p9)
}
  0x1d   : > { %s2390_s30 = smov 128   ;;  %s2391_s5 = smov 8  }
  0x1e   : > { %2132 = dma.hbm_to_vmem [thread:$0]  (!%p2488_p11), %s2761_s1, 512, %s154_s25, [#allocation6], %s2390_s30, %s2390_s30, %s2391_s5  }
  0x1f   : > { %s2275_s8 = scalar_lea.vmem %s167_s28, 512  ;;  %p2283_p2 = scmp.lt.s32.totalorder %s167_s28, %s167_s28 }
  0x20   : > { %p2276_p1 = scmp.ne.s32.totalorder %s167_s28, %s2275_s8  ;;  %p2284_p6 = scmp.lt.s32.totalorder %s2275_s8, %s2275_s8 }
  0x22   : > { %p2278_p13 = pnand %p2276_p1, %p2240_p12  ;;  %p2285_p5 = por %p2284_p6, %p2283_p2 }
  0x24   : > { %p2279_p0 = pneg %p2278_p13 }
  0x26   : > { %p2286_p10 = pnand %p2285_p5, %p2279_p0 }
  0x28   : > { %2289 = shalt.err (!%p2286_p10)
}
  0x29   : > { %2135 = dma.hbm_to_vmem [thread:$0]  (!%p2488_p11), %s2762_s2, 512, %s167_s28, [#allocation6], %s2390_s30, %s2390_s30, %s2391_s5  }
  0x2a   : > { %s2511_s11 = sadd.s32 1, %s2386_s18   ;;  %s28_s12 = sadd.s32 1, %s2382_s17 }
  0x2b   : > { %s25_s13 = ssub.s32 %s2386_s18, %s2511_s11  ;;  %p35_p1 = scmp.ne.s32.totalorder %s2382_s17, %s2378_s16 }
  0x2c   : > { %p26_p2 = scmp.eq.s32.totalorder %s25_s13, 0  ;;  %p36_p6 = scmp.eq.s32.totalorder %s2386_s18, 0 }
  0x2d   : > { %p2773_p12 = scmp.eq.s32.totalorder %s2460_s19, 1  ;;  %p2146_p7 = scmp.lt.s32.totalorder %s2386_s18, 2 }
  0x2e   : > { %s2527_s20 = scalar_select %p26_p2, %s2382_s17, %s28_s12  }
  0x2f   : > { %p2521_p3 = por %p2773_p12, %p35_p1  ;;  %p37_p9 = por %p36_p6, %p35_p1 }
  0x30   : > { %s183_s24 = sand.u32 1, %s2382_s17   ;;  %s1934_s26 = sshll.u32 %s2386_s18, 7 }
  0x31   : > { %s2774_s14 = scalar_select %p2521_p3, 1, 0 }
  0x32   : > { %s1933_s25 = sshll.u32 %s183_s24, 3  ;;  %s2534_s29 = scalar_lea.hbm %s2760_s0, %s1934_s26 }
  0x33   : > { %s187_s30 = scalar_lea.vmem [#allocation2], %s1933_s25  ;;  %p2536_p11 = pnand %p2146_p7, %p37_p9 }
  0x34   : > { %s194_s5 = sshll.u32 %s187_s30, 4  ;;  %s184_s7 = scalar_lea.sflag [#allocation3], %s183_s24  ;;  %s195_s5 = int_to_ptr.vmem [resolvable:$true] %s194_s5 }
  0x35   : > { %s2290_s8 = scalar_lea.hbm %s2534_s29, 128  ;;  %p2292_p0 = pneg %p2536_p11 }
  0x36   : > { %p2291_p13 = scmp.ne.s32.totalorder %s2534_s29, %s2290_s8  ;;  %s2295_s12 = scalar_lea.hbm %s2760_s0, 256 }
  0x37   : > { %p2296_p1 = scmp.lt.s32.totalorder %s2534_s29, %s2760_s0  ;;  %p2297_p2 = scmp.lt.s32.totalorder %s2295_s12, %s2290_s8 }
  0x38   : > { %p2293_p5 = pnand %p2292_p0, %p2291_p13 }
  0x39   : > { %p2298_p6 = por %p2297_p2, %p2296_p1 }
  0x3a   : > { %p2294_p10 = pneg %p2293_p5 }
  0x3c   : > { %p2299_p12 = pnand %p2298_p6, %p2294_p10 }
  0x3e   : > { %2302 = shalt.err (!%p2299_p12)
}
  0x3f   : > { %s2303_s26 = scalar_lea.vmem %s195_s5, 128  ;;  %s2392_s24 = smov [#allocation2]  }
  0x40   : > { %p2304_p7 = scmp.ne.s32.totalorder %s195_s5, %s2303_s26  ;;  %s2308_s27 = sshll.u32 %s2392_s24, 4  ;;  %s2309_s27 = int_to_ptr.vmem [resolvable:$false] %s2308_s27 }
  0x41   : > { %s2310_s28 = scalar_lea.vmem %s2309_s27, 256  ;;  %p2311_p13 = scmp.lt.s32.totalorder %s195_s5, %s2309_s27 }
  0x42   : > { %p2306_p9 = pnand %p2304_p7, %p2292_p0  ;;  %p2312_p5 = scmp.lt.s32.totalorder %s2310_s28, %s2303_s26 }
  0x44   : > { %p2307_p3 = pneg %p2306_p9  ;;  %p2313_p4 = por %p2312_p5, %p2311_p13 }
  0x46   : > { %p2314_p8 = pnand %p2313_p4, %p2307_p3 }
  0x48   : > { %2317 = shalt.err (!%p2314_p8)
}
  0x49   : > { %2139 = dma.hbm_to_vmem [thread:$0]  (!%p2536_p11), %s2534_s29, 128, %s195_s5, %s184_s7  }
  0x4a   : > { %p2776_p10 = scmp.ne.s32.totalorder %s2771_s23, 0 }
  0x4b   : > { %s2557_s30 = sand.u32 (!%p2776_p10), 1, %s2378_s16   ;;  %p2777_p0 = scmp.ne.s32.totalorder (!%p2776_p10), %s2769_s21, 0 }
  0x4c   : > { %203 = sbr.rel (%p2776_p10) target bundleno = 1588 (0x634), region = 36  ;;  %s1936_s8 = sshll.u32 (!%p2776_p10), %s2557_s30, 3 }
  0x4d   : > { %s206_s9 = scalar_lea.sflag (!%p2776_p10), [#allocation3], %s2557_s30  ;;  %s209_s10 = scalar_lea.vmem (!%p2776_p10), [#allocation2], %s1936_s8 }
  0x51   : > { %2361 = dma.done.wait (%p2777_p0), %s206_s9, 128  }
  0x52   : > { %2363 = vsyncadd (%p2777_p0), %s206_s9, 4294967168  ;;  %p2778_p4 = scmp.eq.s32.totalorder %s2460_s19, 0 }
  0x54   : > { %2365 = dma.done.wait (%p2778_p4), [#allocation6], 1024   ;;  %p2779_p8 = pmov %p2778_p4 }
  0x55   : > { %v2393_v0 = vmov 0.0   ;;  %vm2394_vm0 = vmmov 0   ;;  %v246_v1 = vld [vmem:[#allocation5 + $0x18] sm:$0xff]  ;;  %v245_v2 = vld [vmem:[#allocation5 + $0x10] sm:$0xff]  ;;  %v244_v3 = vld [vmem:[#allocation5 + $0x8] sm:$0xff]  ;;  %vm247_vm1 = vcmask 261120  }
  0x56   : > { %2367 = vsyncadd (%p2779_p8), [#allocation6], 4294966272  ;;  %2015 = vmatprep.subr.mxu0 %v2393_v0  ;;  %2023 = vmatprep.mubr.msk.f32.mxu0 %vm2394_vm0, %v2393_v0  ;;  %v243_v4 = vld [vmem:[#allocation5] sm:$0xff]  ;;  %v242_v5 = vld [vmem:[%s209_s10] sm:$0xff]  ;;  %s2395_s21 = smov 116   ;;  %s2396_s23 = smov 124  }
  0x57   : > { %2026 = vmatprep.subr.mxu1 %v2393_v0  ;;  %2028 = vmatprep.mubr.msk.f32.mxu1 %vm2394_vm0, %v2393_v0  ;;  %s2397_s29 = smov 112   ;;  %s2398_s5 = smov 120   ;;  %vm338_vm2 = vcmask 31744   ;;  %vm945_vm3 = vcmask 64512   ;;  %vm1672_vm4 = vcmask 97280   ;;  %vm1674_vm5 = vcmask 130048  }
  0x58   : > { %2016 = vmatpush3.msra.mxu0 %v246_v1  ;;  %s2399_s6 = smov 104   ;;  %s2400_s7 = smov 108   ;;  %vm1676_vm6 = vcmask 162816   ;;  %vm1678_vm7 = vcmask 195584   ;;  %vm1680_vm8 = vcmask 228352   ;;  %vm1794_vm9 = vcmask 523264  }
  0x59   : > { %2017 = vmatprep.subr.mxu0 %v2393_v0  ;;  %s2401_s12 = smov 96   ;;  %s2402_s13 = smov 100   ;;  %vm1796_vm10 = vcmask 785408  }
  0x5a   : > { %2018 = vmatpush3.msra.mxu0 %v245_v2  ;;  %s2403_s25 = smov 64   ;;  %s2404_s26 = smov 4  }
  0x5b   : > { %2019 = vmatprep.subr.mxu0 %v2393_v0  ;;  %s2405_s24 = smov 8   ;;  %s2406_s27 = smov 12  }
  0x5c   : > { %2020 = vmatpush3.msra.mxu0 %v244_v3  ;;  %s2407_s28 = smov 16   ;;  %s2408_s8 = smov 20  }
  0x5d   : > { %2021 = vmatprep.subr.mxu0 %v2393_v0  ;;  %s2409_s9 = smov 28   ;;  %s2410_s10 = smov 24  }
  0x5e   : > { %2022 = vmatpush3.msra.mxu0 %v243_v4  ;;  %p2780_p11 = scmp.ne.s32.totalorder %s2774_s14, 0 }
  0x5f   : > { %2024 = vmatmul.mubr.msk.f32.vlgmr.msra.gmra.mxu0 %vm247_vm1, %v242_v5  ;;  %2046 = vmatprep.subr.mxu0 %v2393_v0 }
  0x60   : > { %2048 = vmatprep.mubr.msk.f32.mxu0 %vm2394_vm0, %v2393_v0 }
 0x11f   : > { %v317_v6 = vpop.f32.mrf.mxu0 }
 0x120   : > { %326 = vrot.lane.b32.xlu1 %v317_v6, %s2395_s21  ;;  %322 = vrot.lane.b32.xlu0 %v317_v6, %s2396_s23 }
 0x121   : > { %v2025_v7 = vpop.f32.mrf.mxu0 }
 0x124   : > { %328 = vrot.lane.b32.xlu1 %v317_v6, %s2397_s29  ;;  %324 = vrot.lane.b32.xlu0 %v317_v6, %s2398_s5  ;;  %s2411_s29 = smov 32   ;;  %s1939_s5 = sshll.u32 %s2557_s30, 1 }
 0x128   : > { %332 = vrot.lane.b32.xlu1 %v317_v6, %s2399_s6  ;;  %330 = vrot.lane.b32.xlu0 %v317_v6, %s2400_s7  ;;  %s1972_s6 = sshll.u32 %s2460_s19, 5  ;;  %s241_s7 = scalar_lea.vmem [#allocation8], %s1939_s5 }
 0x12c   : > { %336 = vrot.lane.b32.xlu1 %v317_v6, %s2401_s12  ;;  %334 = vrot.lane.b32.xlu0 %v317_v6, %s2402_s13 }
 0x192   : > { %v327_v8 = vpop.permute.xlu1 %326  ;;  %v323_v9 = vpop.permute.xlu0 %322 }
 0x193   : > { %413 = vrot.lane.b32.xlu0 %v323_v9, %s2401_s12 }
 0x196   : > { %v329_v10 = vpop.permute.xlu1 %328  ;;  %v325_v11 = vpop.permute.xlu0 %324 }
 0x197   : > { %565 = vrot.lane.b32.xlu0 %v327_v8, %s2401_s12  ;;  %489 = vrot.lane.b32.xlu1 %v325_v11, %s2401_s12 }
 0x19a   : > { %v2586_v12 = vpop.permute.xlu1 %332  ;;  %v2588_v13 = vpop.permute.xlu0 %330 }
 0x19b   : > { %641 = vrot.lane.b32.xlu1 %v329_v10, %s2401_s12  ;;  %717 = vrot.lane.b32.xlu0 %v2588_v13, %s2401_s12 }
 0x19e   : > { %v337_v14 = vpop.permute.xlu1 %336  ;;  %v2593_v15 = vpop.permute.xlu0 %334 }
 0x19f   : > { %2027 = vmatpush3.xpose.msk.msra.mxu1 %vm338_vm2, %v337_v14  ;;  %793 = vrot.lane.b32.xlu1 %v2586_v12, %s2401_s12 }
 0x1a0   : > { %869 = vrot.lane.b32.xlu0 %v2593_v15, %s2401_s12  ;;  %2031 = vmatprep.subr.mxu1 %v2393_v0 }
 0x1a2   : > { %2029 = vmatmul.mubr.msk.f32.vlgmr.msra.gmra.mxu1 %vm338_vm2, %v317_v6 }
 0x1a3   : > { %1094 = vrot.lane.b32.xlu1 %v323_v9, %s2403_s25  ;;  %2033 = vmatprep.mubr.msk.f32.mxu1 %vm2394_vm0, %v2393_v0 }
 0x1a4   : > { %1018 = vrot.lane.b32.xlu0 %v317_v6, %s2403_s25 }
 0x1a7   : > { %1170 = vrot.lane.b32.xlu1 %v325_v11, %s2403_s25 }
 0x1a8   : > { %1246 = vrot.lane.b32.xlu0 %v327_v8, %s2403_s25 }
 0x1ab   : > { %1322 = vrot.lane.b32.xlu1 %v329_v10, %s2403_s25 }
 0x205   : > { %v414_v16 = vpop.permute.xlu0 %413 }
 0x206   : > { %2032 = vmatpush3.xpose.msk.msra.mxu1 %vm338_vm2, %v414_v16 }
 0x207   : > { %2036 = vmatprep.subr.mxu1 %v2393_v0 }
 0x209   : > { %v490_v17 = vpop.permute.xlu1 %489  ;;  %2034 = vmatmul.mubr.msk.f32.vlgmr.msra.gmra.mxu1 %vm338_vm2, %v323_v9  ;;  %v566_v18 = vpop.permute.xlu0 %565 }
 0x20a   : > { %2037 = vmatpush3.xpose.msk.msra.mxu1 %vm338_vm2, %v490_v17  ;;  %2038 = vmatprep.mubr.msk.f32.mxu1 %vm2394_vm0, %v2393_v0 }
 0x20b   : > { %2041 = vmatprep.subr.mxu1 %v2393_v0 }
 0x20d   : > { %v642_v19 = vpop.permute.xlu1 %641  ;;  %2039 = vmatmul.mubr.msk.f32.vlgmr.msra.gmra.mxu1 %vm338_vm2, %v325_v11  ;;  %v718_v20 = vpop.permute.xlu0 %717 }
 0x20e   : > { %2042 = vmatpush3.xpose.msk.msra.mxu1 %vm338_vm2, %v566_v18  ;;  %2047 = vmatpush3.xpose.msk.msra.mxu0 %vm338_vm2, %v642_v19 }
 0x20f   : > { %2043 = vmatprep.mubr.msk.f32.mxu1 %vm2394_vm0, %v2393_v0  ;;  %2056 = vmatprep.subr.mxu0 %v2393_v0 }
 0x210   : > { %2051 = vmatprep.subr.mxu1 %v2393_v0 }
 0x211   : > { %2049 = vmatmul.mubr.msk.f32.vlgmr.msra.gmra.mxu0 %vm338_vm2, %v329_v10  ;;  %v794_v21 = vpop.permute.xlu1 %793  ;;  %2044 = vmatmul.mubr.msk.f32.vlgmr.msra.gmra.mxu1 %vm338_vm2, %v327_v8 }
 0x212   : > { %v870_v22 = vpop.permute.xlu0 %869  ;;  %2052 = vmatpush3.xpose.msk.msra.mxu1 %vm338_vm2, %v718_v20  ;;  %2057 = vmatpush3.xpose.msk.msra.mxu0 %vm338_vm2, %v794_v21 }
 0x213   : > { %2053 = vmatprep.mubr.msk.f32.mxu1 %vm2394_vm0, %v2393_v0  ;;  %2058 = vmatprep.mubr.msk.f32.mxu0 %vm2394_vm0, %v2393_v0 }
 0x214   : > { %2066 = vmatprep.subr.mxu0 %v2393_v0  ;;  %2061 = vmatprep.subr.mxu1 %v2393_v0 }
 0x215   : > { %2059 = vmatmul.mubr.msk.f32.vlgmr.msra.gmra.mxu0 %vm338_vm2, %v2586_v12  ;;  %2054 = vmatmul.mubr.msk.f32.vlgmr.msra.gmra.mxu1 %vm338_vm2, %v2588_v13  ;;  %v1095_v24 = vpop.permute.xlu1 %1094 }
 0x216   : > { %v1019_v23 = vpop.permute.xlu0 %1018  ;;  %2062 = vmatpush3.xpose.msk.msra.mxu1 %vm338_vm2, %v870_v22  ;;  %2063 = vmatprep.mubr.msk.f32.mxu1 %vm2394_vm0, %v2393_v0 }
 0x217   : > { %2067 = vmatpush3.msra.mxu0 %v1019_v23  ;;  %2071 = vmatprep.subr.mxu1 %v2393_v0 }
 0x218   : > { %2068 = vmatprep.mubr.msk.f32.mxu0 %vm2394_vm0, %v2393_v0  ;;  %2076 = vmatprep.subr.mxu0 %v2393_v0 }
 0x219   : > { %2064 = vmatmul.mubr.msk.f32.vlgmr.msra.gmra.mxu1 %vm338_vm2, %v2593_v15  ;;  %v1171_v48 = vpop.permute.xlu1 %1170 }
 0x21a   : > { %2072 = vmatpush3.msra.mxu1 %v1095_v24  ;;  %2073 = vmatprep.mubr.msk.f32.mxu1 %vm2394_vm0, %v2393_v0  ;;  %v1247_v55 = vpop.permute.xlu0 %1246 }
 0x21b   : > { %2081 = vmatprep.subr.mxu1 %v2393_v0 }
 0x21d   : > { %v1323_v49 = vpop.permute.xlu1 %1322 }
 0x262   : > { %v409_v25 = vpop.f32.mrf.mxu1 }
 0x263   : > { %v946_v26 = vsel %vm945_vm3, %v409_v25, -inf }
 0x264   : > { %v2030_v27 = vpop.f32.mrf.mxu1  ;;  %947 = vmax.xlane.f32.xlu1 %v946_v26 }
 0x2c9   : > { %v485_v28 = vpop.f32.mrf.mxu1 }
 0x2ca   : > { %v949_v29 = vsel %vm945_vm3, %v485_v28, -inf }
 0x2cb   : > { %950 = vmax.xlane.f32.xlu0 %v949_v29  ;;  %v2035_v30 = vpop.f32.mrf.mxu1 }
 0x2cd   : > { %v561_v31 = vpop.f32.mrf.mxu1 }
 0x2ce   : > { %v952_v42 = vsel %vm945_vm3, %v561_v31, -inf }
 0x2cf   : > { %v2040_v32 = vpop.f32.mrf.mxu1 }
 0x2d1   : > { %v637_v33 = vpop.f32.mrf.mxu1  ;;  %v713_v34 = vpop.f32.mrf.mxu0 }
 0x2d2   : > { %v955_v35 = vsel %vm945_vm3, %v637_v33, -inf  ;;  %v958_v36 = vsel %vm945_vm3, %v713_v34, -inf }
 0x2d3   : > { %956 = vmax.xlane.f32.xlu1 %v955_v35  ;;  %v2045_v37 = vpop.f32.mrf.mxu1  ;;  %959 = vmax.xlane.f32.xlu0 %v958_v36  ;;  %v2050_v38 = vpop.f32.mrf.mxu0 }
 0x2d5   : > { %v789_v39 = vpop.f32.mrf.mxu1  ;;  %v2653_v40 = vpop.f32.mrf.mxu0 }
 0x2d6   : > { %v961_v41 = vsel %vm945_vm3, %v789_v39, -inf  ;;  %v964_v54 = vsel %vm945_vm3, %v2653_v40, -inf }
 0x2d7   : > { %962 = vmax.xlane.f32.xlu1 %v961_v41  ;;  %v2055_v43 = vpop.f32.mrf.mxu1  ;;  %953 = vmax.xlane.f32.xlu0 %v952_v42  ;;  %v2060_v44 = vpop.f32.mrf.mxu0 }
 0x2d9   : > { %v941_v45 = vpop.f32.mrf.mxu1 }
 0x2da   : > { %v967_v46 = vsel %vm945_vm3, %v941_v45, -inf }
 0x2db   : > { %968 = vmax.xlane.f32.xlu1 %v967_v46  ;;  %v2065_v47 = vpop.f32.mrf.mxu1 }
 0x2ec   : > { %1474 = vrot.lane.b32.xlu1 %v2586_v12, %s2403_s25 }
 0x2ed   : > { %v948_v50 = vpop.xlane.xlu1 %947  ;;  %1398 = vrot.lane.b32.xlu0 %v2588_v13, %s2403_s25 }
 0x2ee   : > { %v970_v51 = vsub.f32 %v409_v25, %v948_v50 }
 0x2f0   : > { %v978_v52 = vmul.f32 1.442695, %v970_v51 }
 0x2f2   : > { %2206 = vpow2.f32 %v978_v52 }
 0x2ff   : > { %v2662_v53 = vpop.eup %2206 }
 0x300   : > { %2069 = vmatmul.mubr.msk.f32.vlgmr.msra.gmra.mxu0 %vm945_vm3, %v2662_v53 }
 0x301   : > { %2077 = vmatpush3.msra.mxu0 %v1171_v48  ;;  %2078 = vmatprep.mubr.msk.f32.mxu0 %vm2394_vm0, %v2393_v0 }
 0x302   : > { %2086 = vmatprep.subr.mxu0 %v2393_v0 }
 0x30c   : > { %965 = vmax.xlane.f32.xlu0 %v964_v54 }
 0x322   : > { %1550 = vrot.lane.b32.xlu0 %v2593_v15, %s2403_s25 }
 0x354   : > { %v951_v56 = vpop.xlane.xlu0 %950 }
 0x355   : > { %v971_v57 = vsub.f32 %v485_v28, %v951_v56 }
 0x357   : > { %v980_v58 = vmul.f32 1.442695, %v971_v57 }
 0x359   : > { %2208 = vpow2.f32 %v980_v58 }
 0x35c   : > { %v957_v59 = vpop.xlane.xlu1 %956  ;;  %v960_v60 = vpop.xlane.xlu0 %959 }
 0x35d   : > { %v973_v61 = vsub.f32 %v637_v33, %v957_v59  ;;  %v974_v62 = vsub.f32 %v713_v34, %v960_v60  ;;  %v1685_v60 = vld [vmem:[#allocation7 + $0x18] sm:$0xff] }
 0x35f   : > { %v984_v63 = vmul.f32 1.442695, %v973_v61  ;;  %v986_v1 = vmul.f32 1.442695, %v974_v62  ;;  %v1684_v61 = vld [vmem:[#allocation7 + $0x10] sm:$0xff]  ;;  %v1683_v62 = vld [vmem:[#allocation7 + $0x8] sm:$0xff] }
 0x360   : > { %v963_v2 = vpop.xlane.xlu1 %962  ;;  %v954_v3 = vpop.xlane.xlu0 %953 }
 0x361   : > { %2210 = vpow2.f32 %v984_v63  ;;  %v975_v4 = vsub.f32 %v789_v39, %v963_v2  ;;  %v972_v5 = vsub.f32 %v561_v31, %v954_v3  ;;  %v994_v31 = vsel %vm945_vm3, %v2662_v53, 0.0 }
 0x362   : > { %2212 = vpow2.f32 %v986_v1 }
 0x363   : > { %v988_v6 = vmul.f32 1.442695, %v975_v4  ;;  %v982_v7 = vmul.f32 1.442695, %v972_v5  ;;  %v1682_v5 = vld [vmem:[#allocation7] sm:$0xff] }
 0x364   : > { %v969_v8 = vpop.xlane.xlu1 %968  ;;  %v1399_v15 = vpop.permute.xlu0 %1398 }
 0x365   : > { %2214 = vpow2.f32 %v988_v6  ;;  %v977_v11 = vsub.f32 %v941_v45, %v969_v8 }
 0x366   : > { %v2209_v9 = vpop.eup %2208  ;;  %2216 = vpow2.f32 %v982_v7 }
 0x367   : > { %2074 = vmatmul.mubr.msk.f32.vlgmr.msra.gmra.mxu1 %vm945_vm3, %v2209_v9  ;;  %v997_v10 = vsel %vm945_vm3, %v2209_v9, 0.0  ;;  %v992_v12 = vmul.f32 1.442695, %v977_v11 }
 0x368   : > { %2082 = vmatpush3.msra.mxu1 %v1247_v55  ;;  %998 = vadd.xlane.f32.xlu1 %v997_v10  ;;  %v1475_v20 = vpop.permute.xlu1 %1474 }
 0x369   : > { %2083 = vmatprep.mubr.msk.f32.mxu1 %vm2394_vm0, %v2393_v0  ;;  %2091 = vmatprep.subr.mxu1 %v2393_v0  ;;  %2218 = vpow2.f32 %v992_v12 }
 0x36e   : > { %v2211_v13 = vpop.eup %2210 }
 0x36f   : > { %v2213_v14 = vpop.eup %2212  ;;  %2084 = vmatmul.mubr.msk.f32.vlgmr.msra.gmra.mxu1 %vm945_vm3, %v2211_v13  ;;  %v1003_v21 = vsel %vm945_vm3, %v2211_v13, 0.0 }
 0x370   : > { %2092 = vmatpush3.msra.mxu1 %v1399_v15  ;;  %v1006_v16 = vsel %vm945_vm3, %v2213_v14, 0.0  ;;  %2093 = vmatprep.mubr.msk.f32.mxu1 %vm2394_vm0, %v2393_v0 }
 0x371   : > { %1007 = vadd.xlane.f32.xlu1 %v1006_v16  ;;  %2101 = vmatprep.subr.mxu1 %v2393_v0 }
 0x372   : > { %v2215_v17 = vpop.eup %2214 }
 0x373   : > { %v2217_v18 = vpop.eup %2216  ;;  %2094 = vmatmul.mubr.msk.f32.vlgmr.msra.gmra.mxu1 %vm945_vm3, %v2215_v17  ;;  %v1009_v22 = vsel %vm945_vm3, %v2215_v17, 0.0 }
 0x374   : > { %2079 = vmatmul.mubr.msk.f32.vlgmr.msra.gmra.mxu0 %vm945_vm3, %v2217_v18  ;;  %v1000_v19 = vsel %vm945_vm3, %v2217_v18, 0.0  ;;  %2103 = vmatprep.mubr.msk.f32.mxu1 %vm2394_vm0, %v2393_v0 }
 0x375   : > { %2087 = vmatpush3.msra.mxu0 %v1323_v49  ;;  %1001 = vadd.xlane.f32.xlu0 %v1000_v19 }
 0x376   : > { %2088 = vmatprep.mubr.msk.f32.mxu0 %vm2394_vm0, %v2393_v0  ;;  %2096 = vmatprep.subr.mxu0 %v2393_v0  ;;  %v2219_v23 = vpop.eup %2218 }
 0x377   : > { %v1015_v24 = vsel %vm945_vm3, %v2219_v23, 0.0 }
 0x378   : > { %2089 = vmatmul.mubr.msk.f32.vlgmr.msra.gmra.mxu0 %vm945_vm3, %v2213_v14 }
 0x379   : > { %2097 = vmatpush3.msra.mxu0 %v1475_v20  ;;  %1004 = vadd.xlane.f32.xlu0 %v1003_v21 }
 0x37a   : > { %2098 = vmatprep.mubr.msk.f32.mxu0 %vm2394_vm0, %v2393_v0  ;;  %2106 = vmatprep.subr.mxu0 %v2393_v0 }
 0x37d   : > { %1010 = vadd.xlane.f32.xlu0 %v1009_v22 }
 0x381   : > { %1016 = vadd.xlane.f32.xlu0 %v1015_v24 }
 0x395   : > { %v966_v25 = vpop.xlane.xlu0 %965 }
 0x396   : > { %v976_v26 = vsub.f32 %v2653_v40, %v966_v25 }
 0x398   : > { %v990_v27 = vmul.f32 1.442695, %v976_v26  ;;  %v1965_v26 = vld [vmem:[%s2763_s3] ss:$0 sm:$0xff] }
 0x399   : > { %v1551_v28 = vpop.permute.xlu0 %1550 }
 0x39a   : > { %2220 = vpow2.f32 %v990_v27  ;;  %2102 = vmatpush3.msra.mxu1 %v1551_v28 }
 0x39b   : > { %2104 = vmatmul.mubr.msk.f32.vlgmr.msra.gmra.mxu1 %vm945_vm3, %v2219_v23 }
 0x3a7   : > { %v2221_v29 = vpop.eup %2220 }
 0x3a8   : > { %2099 = vmatmul.mubr.msk.f32.vlgmr.msra.gmra.mxu0 %vm945_vm3, %v2221_v29  ;;  %v1012_v30 = vsel %vm945_vm3, %v2221_v29, 0.0 }
 0x3a9   : > { %1013 = vadd.xlane.f32.xlu1 %v1012_v30  ;;  %2114 = vmatprep.mubr.msk.f32.mxu0 %vm2394_vm0, %v2393_v0 }
 0x3aa   : > { %2107 = vmatpush3.msra.mxu0 %v1685_v60 }
 0x3ab   : > { %2108 = vmatprep.subr.mxu0 %v2393_v0 }
 0x3ac   : > { %2109 = vmatpush3.msra.mxu0 %v1684_v61 }
 0x3ad   : > { %995 = vadd.xlane.f32.xlu1 %v994_v31  ;;  %2110 = vmatprep.subr.mxu0 %v2393_v0 }
 0x3ae   : > { %2111 = vmatpush3.msra.mxu0 %v1683_v62 }
 0x3af   : > { %2112 = vmatprep.subr.mxu0 %v2393_v0 }
 0x3b0   : > { %2113 = vmatpush3.msra.mxu0 %v1682_v5 }
 0x3c0   : > { %v2706_v32 = vpop.f32.mrf.mxu0 }
 0x3c2   : > { %v2070_v33 = vpop.f32.mrf.mxu0 }
 0x3f1   : > { %v999_v34 = vpop.xlane.xlu1 %998 }
 0x3f2   : > { %2222 = vrcp.f32 %v999_v34 }
 0x3fa   : > { %v1008_v38 = vpop.xlane.xlu1 %1007 }
 0x3fe   : > { %v1002_v35 = vpop.xlane.xlu0 %1001 }
 0x3ff   : > { %v2223_v37 = vpop.eup %2222  ;;  %2224 = vrcp.f32 %v1002_v35 }
 0x400   : > { %2226 = vrcp.f32 %v1008_v38  ;;  %v2412_v38 = vmov 1966171168  }
 0x402   : > { %v1005_v36 = vpop.xlane.xlu0 %1004 }
 0x403   : > { %2228 = vrcp.f32 %v1005_v36 }
 0x406   : > { %v1011_v42 = vpop.xlane.xlu0 %1010 }
 0x407   : > { %2230 = vrcp.f32 %v1011_v42 }
 0x40a   : > { %v1017_v59 = vpop.xlane.xlu0 %1016 }
 0x40b   : > { %2232 = vrcp.f32 %v1017_v59 }
 0x40c   : > { %v2225_v46 = vpop.eup %2224 }
 0x40d   : > { %v2227_v51 = vpop.eup %2226 }
 0x410   : > { %v2229_v52 = vpop.eup %2228 }
 0x414   : > { %v2231_v57 = vpop.eup %2230 }
 0x418   : > { %v2233_v1 = vpop.eup %2232 }
 0x427   : > { %v1166_v39 = vpop.f32.mrf.mxu1 }
 0x428   : > { %v1635_v40 = vmul.f32 %v2223_v37, %v1166_v39  ;;  %v1805_v39 = vunpack.c.l.s4 %v2412_v38 }
 0x429   : > { %v2075_v41 = vpop.f32.mrf.mxu1 }
 0x42a   : > { %1643 = vrot.lane.b32.xlu0 %v1635_v40, %s2404_s26  ;;  %v1807_v40 = vlaneseq  ;;  %s1837_s26 = scalar_lea.hbm %s2764_s4, %s1972_s6 }
 0x42c   : > { %vm1821_vm11 = vcmp.lt.s32.totalorder %v1807_v40, 256 }
 0x42f   : > { %v1318_v43 = vpop.f32.mrf.mxu1 }
 0x430   : > { %v1637_v54 = vmul.f32 %v2229_v52, %v1318_v43  ;;  %v1806_v43 = vunpack.c.0.s8 %v1805_v39 }
 0x431   : > { %v2085_v44 = vpop.f32.mrf.mxu1 }
 0x432   : > { %v1014_v63 = vpop.xlane.xlu1 %1013  ;;  %v1808_v44 = vshrl.u32 %v1807_v40, 7 }
 0x433   : > { %v1470_v45 = vpop.f32.mrf.mxu1  ;;  %2234 = vrcp.f32 %v1014_v63 }
 0x434   : > { %v1242_v47 = vpop.f32.mrf.mxu0  ;;  %v1639_v58 = vmul.f32 %v2231_v57, %v1470_v45 }
 0x435   : > { %v1636_v48 = vmul.f32 %v2225_v46, %v1242_v47  ;;  %v2095_v49 = vpop.f32.mrf.mxu1 }
 0x436   : > { %v2080_v50 = vpop.f32.mrf.mxu0  ;;  %v996_v10 = vpop.xlane.xlu1 %995 }
 0x437   : > { %1647 = vrot.lane.b32.xlu1 %v1636_v48, %s2405_s24  ;;  %2236 = vrcp.f32 %v996_v10  ;;  %s1825_s24 = scalar_lea.sflag [#allocation4], %s2557_s30 }
 0x438   : > { %v1394_v53 = vpop.f32.mrf.mxu0 }
 0x439   : > { %v1638_v55 = vmul.f32 %v2227_v51, %v1394_v53  ;;  %v1809_v51 = vsub.s32 %v1806_v43, %v1808_v44 }
 0x43a   : > { %v2090_v56 = vpop.f32.mrf.mxu0 }
 0x43b   : > { %1651 = vrot.lane.b32.xlu1 %v1637_v54, %s2406_s27  ;;  %1655 = vrot.lane.b32.xlu0 %v1638_v55, %s2407_s28  ;;  %s2413_s28 = smov [#allocation8]  }
 0x43f   : > { %1659 = vrot.lane.b32.xlu1 %v1639_v58, %s2408_s8  ;;  %s2322_s8 = sshll.u32 %s2413_s28, 4  ;;  %s2323_s8 = int_to_ptr.vmem [resolvable:$false] %s2322_s8 }
 0x440   : > { %v2235_v6 = vpop.eup %2234  ;;  %s2324_s19 = scalar_lea.vmem %s2323_s8, 64 }
 0x444   : > { %v2237_v0 = vpop.eup %2236 }
 0x445   : > { %v1634_v14 = vmul.f32 %v2237_v0, %v2706_v32 }
 0x45b   : > { %v1622_v2 = vpop.f32.mrf.mxu1 }
 0x45c   : > { %v1641_v3 = vmul.f32 %v2233_v1, %v1622_v2 }
 0x45d   : > { %v2105_v4 = vpop.f32.mrf.mxu1 }
 0x45e   : > { %1667 = vrot.lane.b32.xlu1 %v1641_v3, %s2409_s9 }
 0x468   : > { %v1546_v7 = vpop.f32.mrf.mxu0 }
 0x469   : > { %v1640_v8 = vmul.f32 %v2235_v6, %v1546_v7 }
 0x46a   : > { %v2100_v9 = vpop.f32.mrf.mxu0 }
 0x46b   : > { %1663 = vrot.lane.b32.xlu0 %v1640_v8, %s2410_s10 }
 0x49c   : > { %v1644_v12 = vpop.permute.xlu0 %1643 }
 0x49d   : > { %v1670_v15 = vsel %vm338_vm2, %v1634_v14, %v1644_v12 }
 0x4a9   : > { %v1648_v11 = vpop.permute.xlu1 %1647 }
 0x4aa   : > { %v1671_v16 = vsel %vm945_vm3, %v1670_v15, %v1648_v11 }
 0x4ad   : > { %v1652_v13 = vpop.permute.xlu1 %1651  ;;  %v1656_v18 = vpop.permute.xlu0 %1655 }
 0x4ae   : > { %v1673_v17 = vsel %vm1672_vm4, %v1671_v16, %v1652_v13 }
 0x4af   : > { %v1675_v20 = vsel %vm1674_vm5, %v1673_v17, %v1656_v18 }
 0x4b1   : > { %v1660_v19 = vpop.permute.xlu1 %1659 }
 0x4b2   : > { %v1677_v21 = vsel %vm1676_vm6, %v1675_v20, %v1660_v19 }
 0x4d0   : > { %v1668_v23 = vpop.permute.xlu1 %1667 }
 0x4dd   : > { %v1664_v22 = vpop.permute.xlu0 %1663 }
 0x4de   : > { %v1679_v24 = vsel %vm1678_vm7, %v1677_v21, %v1664_v22 }
 0x4df   : > { %v1681_v25 = vsel %vm1680_vm8, %v1679_v24, %v1668_v23 }
 0x4e0   : > { %2115 = vmatmul.mubr.msk.f32.vlgmr.msra.gmra.mxu0 %vm247_vm1, %v1681_v25 }
 0x5a0   : > { %v1762_v27 = vpop.f32.mrf.mxu0 }
 0x5a1   : > { %v1763_v28 = vadd.f32 %v1965_v26, %v1762_v27 }
 0x5a2   : > { %v2116_v29 = vpop.f32.mrf.mxu0 }
 0x5a3   : > { %v1781_v30 = vrot.slane %v1763_v28, 5  ;;  %v1767_v31 = vrot.slane %v1763_v28, 1  ;;  %v1785_v32 = vrot.slane %v1763_v28, 6  ;;  %v1771_v33 = vrot.slane %v1763_v28, 2 }
 0x5a4   : > { %v1789_v34 = vrot.slane %v1763_v28, 7  ;;  %v1775_v35 = vrot.slane %v1763_v28, 3  ;;  %v1779_v45 = vrot.slane %v1763_v28, 4 }
 0x5a5   : > { %1782 = vrot.lane.b32.xlu1 %v1781_v30, %s2411_s29  ;;  %1768 = vrot.lane.b32.xlu0 %v1767_v31, %s2411_s29 }
 0x5a9   : > { %1786 = vrot.lane.b32.xlu1 %v1785_v32, %s2403_s25  ;;  %1772 = vrot.lane.b32.xlu0 %v1771_v33, %s2403_s25 }
 0x5ad   : > { %1790 = vrot.lane.b32.xlu1 %v1789_v34, %s2401_s12  ;;  %1776 = vrot.lane.b32.xlu0 %v1775_v35, %s2401_s12  ;;  %s1839_s12 = sshll.u32 %s241_s7, 4  ;;  %s1840_s12 = int_to_ptr.vmem [resolvable:$true] %s1839_s12 }
 0x5ae   : > { %s2318_s27 = scalar_lea.vmem %s1840_s12, 32  ;;  %p2325_p6 = scmp.lt.s32.totalorder %s1840_s12, %s2323_s8 }
 0x5af   : > { %p2319_p3 = scmp.ne.s32.totalorder %s1840_s12, %s2318_s27  ;;  %p2326_p12 = scmp.lt.s32.totalorder %s2324_s19, %s2318_s27 }
 0x5b1   : > { %p2320_p1 = pnand %p2319_p3, %p2780_p11  ;;  %p2327_p7 = por %p2326_p12, %p2325_p6 }
 0x5b3   : > { %p2321_p2 = pneg %p2320_p1 }
 0x5b5   : > { %p2328_p9 = pnand %p2327_p7, %p2321_p2 }
 0x617   : > { %v1783_v36 = vpop.permute.xlu1 %1782  ;;  %v1769_v37 = vpop.permute.xlu0 %1768 }
 0x618   : > { %v1798_v46 = vsel %vm247_vm1, %v1779_v45, %v1783_v36  ;;  %v1793_v47 = vsel %vm247_vm1, %v1763_v28, %v1769_v37 }
 0x61b   : > { %v1787_v41 = vpop.permute.xlu1 %1786  ;;  %v1773_v42 = vpop.permute.xlu0 %1772 }
 0x61c   : > { %v1799_v48 = vsel %vm1794_vm9, %v1798_v46, %v1787_v41  ;;  %v1795_v49 = vsel %vm1794_vm9, %v1793_v47, %v1773_v42 }
 0x61f   : > { %v1791_v50 = vpop.permute.xlu1 %1790  ;;  %v1777_v52 = vpop.permute.xlu0 %1776 }
 0x620   : > { %v1800_v53 = vsel %vm1796_vm10, %v1799_v48, %v1791_v50  ;;  %v1797_v54 = vsel %vm1796_vm10, %v1795_v49, %v1777_v52 }
 0x621   : > { %v1803_v55 = vcombine.low %v1797_v54, %v1800_v53 }
 0x623   : > { %v1810_v56 = vrot.slane %v1803_v55, %v1809_v51 }
 0x625   : > { %v1817_v57 = vrot.slane %v1810_v56, %v1809_v51 }
 0x627   : > { %1823 = vst.msk [vmem:[%s241_s7] sm:$0x3] %vm1821_vm11, %v1817_v57 }
 0x628   : > { %2331 = shalt.err (!%p2328_p9)
}
 0x629   : > { %s2332_s9 = scalar_lea.hbm %s1837_s26, 32  ;;  %s2336_s21 = scalar_lea.hbm %s2764_s4, 64 }
 0x62a   : > { %p2333_p13 = scmp.ne.s32.totalorder %s1837_s26, %s2332_s9  ;;  %p2337_p0 = scmp.lt.s32.totalorder %s1837_s26, %s2764_s4 }
 0x62b   : > { %p2338_p4 = scmp.lt.s32.totalorder %s2336_s21, %s2332_s9 }
 0x62c   : > { %p2334_p5 = pnand %p2333_p13, %p2780_p11 }
 0x62d   : > { %p2339_p8 = por %p2338_p4, %p2337_p0 }
 0x62e   : > { %p2335_p10 = pneg %p2334_p5 }
 0x630   : > { %p2340_p3 = pnand %p2339_p8, %p2335_p10 }
 0x632   : > { %2343 = shalt.err (!%p2340_p3)
}
 0x633   : > { %2127 = dma.vmem_to_hbm [thread:$0]  (%p2780_p11), %s1840_s12, 32, %s1837_s26, %s1825_s24  }
 0x634 PF: > { %s1851_s5 = sand.u32 1, %s2374_s15   ;;  %p2781_p1 = scmp.ne.s32.totalorder %s2770_s22, 0 }
 0x635   : > { %p2782_p2 = scmp.ge.s32.totalorder %s2386_s18, 2  ;;  %s1852_s6 = scalar_lea.sflag [#allocation4], %s1851_s5 }
 0x637   : > { %p2141_p6 = pnand %p2782_p2, %p2781_p1 }
 0x639   : > { %p2142_p12 = pneg %p2141_p6 }
 0x63b   : > { %2369 = dma.done.wait (%p2142_p12), %s1852_s6, 32  }
 0x63c   : > { %2371 = vsyncadd (%p2142_p12), %s1852_s6, 4294967264  ;;  %p18_p7 = scmp.ge.s32.totalorder %s2511_s11, 4   ;;  %s2783_s15 = smov %s2378_s16 }
 0x63d   : > { %s2784_s16 = smov %s2382_s17  ;;  %s2785_s17 = smov %s2527_s20 }
 0x63e   : > { %s2786_s18 = smov %s2511_s11  ;;  %20 = sbr.rel (!%p18_p7) target bundleno = 6 (0x6), region = 89 }
 0x643   :  { %1857 = vsyncpa [#allocation3], 1 }
 0x644   :  { %1859 = vsyncpa [#allocation3 + $0x1], 1 }
 0x645   :  { %1860 = vsyncpa [#allocation6], 1 }
 0x646   :  { %1861 = vsyncpa [#allocation4], 1 }
 0x647   :  { %1863 = vsyncpa [#allocation4 + $0x1], 1 }

</bundles_post_ra>
